<compile_context>
chip_gen: v7x
topology: tpu7x:2x2x1
jax: 0.10.0
libtpu: 0.0.40
codegen_flags: <defaults>
</compile_context>

<pallas_src>
import functools

import jax
import jax.numpy as jnp
from jax.experimental import pallas as pl
from jax.experimental.pallas import tpu as pltpu


def _focal_power(base, gamma):
    """base**gamma with a static gamma; use VPU multiplies for integer gamma."""
    g = float(gamma)
    if g == 0.0:
        return jnp.ones_like(base)
    if g == int(g) and 1.0 <= g <= 8.0:
        n = int(g)
        out = base
        for _ in range(n - 1):
            out = out * base
        return out
    return jnp.power(base, g)   # fractional gamma fallback (2 extra EUP ops)


def _focal_loss_kernel(x_ref, t_ref, out_ref, *, alpha, gamma, hw, tile_hw,
                       ignore_index):
    j = pl.program_id(1)

    @pl.when(j == 0)
    def _():
        out_ref[...] = jnp.zeros_like(out_ref)

    x = x_ref[0].astype(jnp.float32)      # (C, tile_hw)  classes on sublanes
    t = t_ref[0]                          # (1, tile_hw)  int32 targets

    # log-softmax over the class (sublane) axis, independently per pixel (lane)
    m = jnp.max(x, axis=0, keepdims=True)                               # (1, T)
    lse = jnp.log(jnp.sum(jnp.exp(x - m), axis=0, keepdims=True)) + m   # (1, T)

    # gather the target-class logit via a one-hot select over the class axis
    class_ids = jax.lax.broadcasted_iota(jnp.int32, x.shape, dimension=0)
    x_t = jnp.sum(jnp.where(class_ids == t, x, 0.0), axis=0, keepdims=True)
    log_pt = x_t - lse                                                  # (1, T)

    pt = jnp.exp(log_pt)
    one_minus_pt = jnp.maximum(1.0 - pt, 0.0)   # clamp: pt may round above 1
    focal = (-alpha) * _focal_power(one_minus_pt, gamma) * log_pt       # (1, T)

    # mask tail lanes (last spatial tile) and/or ignored targets
    needs_tail_mask = (hw % tile_hw) != 0
    if needs_tail_mask or ignore_index is not None:
        valid = jnp.ones(focal.shape, dtype=jnp.bool_)
        if needs_tail_mask:
            lane = jax.lax.broadcasted_iota(jnp.int32, focal.shape, dimension=1)
            valid = valid & ((j * tile_hw + lane) < hw)
        if ignore_index is not None:
            valid = valid & (t != ignore_index)
        focal = jnp.where(valid, focal, 0.0)

    # accumulate into the VMEM-resident per-batch output block (reduced in XLA)
    out_ref[...] += focal[None]


def focal_loss_pallas(inputs, targets, alpha=0.25, gamma=2.0, reduction="mean",
                      ignore_index=None, max_tile_hw=65536,
                      vmem_block_budget_bytes=8 * 1024 * 1024):
    """inputs: (N, C, H, W) float; targets: (N, H, W) int. Scalar focal loss."""
    n, c, h, w = inputs.shape
    hw = h * w

    # Free reshapes only — no transpose, no wrapper-side upcast.
    x = inputs.reshape(n, c, hw)
    t = targets.astype(jnp.int32).reshape(n, 1, hw)

    # Pick the largest 128-multiple spatial tile under a modest double-buffered
    # VMEM budget (f32 worst case); a full-row tile is always legal.
    per_lane_bytes = 2 * 4 * (c + 1)            # double-buffered x + targets
    tile_hw = (vmem_block_budget_bytes // per_lane_bytes) // 128 * 128
    tile_hw = max(128, min(tile_hw, max_tile_hw))
    if hw <= tile_hw:
        tile_hw = hw
    num_tiles = pl.cdiv(hw, tile_hw)

    kernel = functools.partial(
        _focal_loss_kernel, alpha=float(alpha), gamma=float(gamma), hw=hw,
        tile_hw=tile_hw, ignore_index=ignore_index)

    partial_sums = pl.pallas_call(
        kernel,
        out_shape=jax.ShapeDtypeStruct((n, 1, tile_hw), jnp.float32),
        grid_spec=pltpu.PrefetchScalarGridSpec(
            num_scalar_prefetch=0,
            grid=(n, num_tiles),
            in_specs=[
                pl.BlockSpec((1, c, tile_hw), lambda i, j: (i, 0, j)),
                pl.BlockSpec((1, 1, tile_hw), lambda i, j: (i, 0, j)),
            ],
            out_specs=pl.BlockSpec((1, 1, tile_hw), lambda i, j: (i, 0, 0)),
        ),
        compiler_params=pltpu.CompilerParams(
            dimension_semantics=("parallel", "arbitrary")),
    )(x, t)

    total = jnp.sum(partial_sums)
    if reduction == "sum":
        return total
    if reduction == "mean":
        if ignore_index is None:
            denom = jnp.float32(n * hw)
        else:
            denom = jnp.sum(targets != ignore_index).astype(jnp.float32)
        return total / denom
    # TODO(synk): reduction='none' (per-pixel output) not implemented.
    raise NotImplementedError("reduction must be 'mean' or 'sum'")


def focal_loss_ref(inputs, targets, alpha=0.25, gamma=2.0):
    """Pure-JAX reference mirroring the PyTorch module (reduction='mean')."""
    n, c, h, w = inputs.shape
    log_probs = jax.nn.log_softmax(inputs.astype(jnp.float32), axis=1)
    log_probs = jnp.transpose(log_probs, (0, 2, 3, 1)).reshape(-1, c)
    t = targets.astype(jnp.int32).reshape(-1)
    log_pt = jnp.take_along_axis(log_probs, t[:, None], axis=1)[:, 0]
    pt = jnp.exp(log_pt)
    fl = -alpha * (1.0 - pt) ** gamma * log_pt
    return jnp.mean(fl)


if __name__ == "__main__":
    key = jax.random.PRNGKey(0)
    k1, k2, k3, k4 = jax.random.split(key, 4)

    # Primary config implied by the module: NCHW logits, integer class targets.
    N, C, H, W = 2, 4, 16, 16
    inputs = jax.random.normal(k1, (N, C, H, W), dtype=jnp.float32)
    targets = jax.random.randint(k2, (N, H, W), 0, C, dtype=jnp.int32)

    loss = focal_loss_pallas(inputs, targets, alpha=0.25, gamma=2.0)
    loss = jax.block_until_ready(loss)
    ref = focal_loss_ref(inputs, targets, alpha=0.25, gamma=2.0)
    assert jnp.allclose(loss, ref, rtol=1e-5, atol=1e-6), (loss, ref)

    # Exercise the masked-tail path: H*W = 400 with a forced 128-lane tile.
    N2, C2, H2, W2 = 2, 4, 20, 20
    inputs2 = jax.random.normal(k3, (N2, C2, H2, W2), dtype=jnp.float32)
    targets2 = jax.random.randint(k4, (N2, H2, W2), 0, C2, dtype=jnp.int32)
    loss2 = focal_loss_pallas(inputs2, targets2, alpha=0.25, gamma=2.0,
                              max_tile_hw=128)
    loss2 = jax.block_until_ready(loss2)
    ref2 = focal_loss_ref(inputs2, targets2, alpha=0.25, gamma=2.0)
    assert jnp.allclose(loss2, ref2, rtol=1e-5, atol=1e-6), (loss2, ref2)

    print("KERNEL_OK")
</pallas_src>

<mosaic_0001>
module attributes {stable_mosaic.version = 11 : i64} {
  func.func @_focal_loss_kernel(%arg0: i32, %arg1: i32, %arg2: memref<1x4x256xf32, #tpu.memory_space<vmem>>, %arg3: memref<1x1x256xi32, #tpu.memory_space<vmem>>, %arg4: memref<1x1x256xf32, #tpu.memory_space<vmem>>) attributes {dimension_semantics = [#tpu.dimension_semantics<parallel>, #tpu.dimension_semantics<arbitrary>], iteration_bounds = array<i64: 2, 1>, scalar_prefetch = 0 : i64, scratch_operands = 0 : i64, tpu.core_type = #tpu.core_type<tc>, window_params = [{transform_indices = @transform_0, window_bounds = array<i64: 1, 4, 256>}, {transform_indices = @transform_1, window_bounds = array<i64: 1, 1, 256>}, {transform_indices = @transform_2, window_bounds = array<i64: 1, 1, 256>}]} {
    %c0_i32 = arith.constant 0 : i32
    %0 = arith.cmpi eq, %arg1, %c0_i32 : i32
    %1 = arith.extui %0 : i1 to i32
    %c0_i32_0 = arith.constant 0 : i32
    %2 = arith.cmpi ne, %1, %c0_i32_0 : i32
    scf.if %2 {
      %cst_18 = arith.constant 0.000000e+00 : f32
      %37 = vector.broadcast %cst_18 : f32 to vector<1x1x256xf32>
      %c0_19 = arith.constant 0 : index
      %c0_20 = arith.constant 0 : index
      %c0_21 = arith.constant 0 : index
      %38 = vector.load %arg4[%c0_19, %c0_20, %c0_21] : memref<1x1x256xf32, #tpu.memory_space<vmem>>, vector<1x1x256xf32>
      tpu.vector_store %arg4[%c0_19, %c0_20, %c0_21], %37 {strides = array<i32>} : memref<1x1x256xf32, #tpu.memory_space<vmem>>, vector<1x1x256xf32>,
    } else {
    }
    %c0 = arith.constant 0 : index
    %c0_1 = arith.constant 0 : index
    %c0_2 = arith.constant 0 : index
    %3 = vector.load %arg2[%c0, %c0_1, %c0_2] : memref<1x4x256xf32, #tpu.memory_space<vmem>>, vector<1x4x256xf32>
    %4 = vector.shape_cast %3 : vector<1x4x256xf32> to vector<4x256xf32>
    %c0_3 = arith.constant 0 : index
    %c0_4 = arith.constant 0 : index
    %c0_5 = arith.constant 0 : index
    %5 = vector.load %arg3[%c0_3, %c0_4, %c0_5] : memref<1x1x256xi32, #tpu.memory_space<vmem>>, vector<1x1x256xi32>
    %6 = vector.shape_cast %5 : vector<1x1x256xi32> to vector<1x256xi32>
    %cst = arith.constant dense<0xFF800000> : vector<256xf32>
    %7 = vector.multi_reduction <maximumf>, %4, %cst [0] : vector<4x256xf32> to vector<256xf32>
    %8 = vector.shape_cast %7 : vector<256xf32> to vector<1x256xf32>
    %9 = vector.broadcast %8 : vector<1x256xf32> to vector<4x256xf32>
    %10 = arith.subf %4, %9 : vector<4x256xf32>
    %11 = math.exp %10 : vector<4x256xf32>
    %cst_6 = arith.constant dense<0.000000e+00> : vector<256xf32>
    %12 = vector.multi_reduction <add>, %11, %cst_6 [0] : vector<4x256xf32> to vector<256xf32>
    %13 = vector.shape_cast %12 : vector<256xf32> to vector<1x256xf32>
    %14 = math.log %13 : vector<1x256xf32>
    %15 = arith.addf %14, %8 : vector<1x256xf32>
    %16 = tpu.iota {dimensions = array<i32: 0>} : vector<4x256xi32>
    %17 = vector.broadcast %6 : vector<1x256xi32> to vector<4x256xi32>
    %18 = arith.cmpi eq, %16, %17 : vector<4x256xi32>
    %cst_7 = arith.constant 0.000000e+00 : f32
    %19 = vector.broadcast %cst_7 : f32 to vector<4x256xf32>
    %20 = arith.select %18, %4, %19 : vector<4x256xi1>, vector<4x256xf32>
    %cst_8 = arith.constant dense<0.000000e+00> : vector<256xf32>
    %21 = vector.multi_reduction <add>, %20, %cst_8 [0] : vector<4x256xf32> to vector<256xf32>
    %22 = vector.shape_cast %21 : vector<256xf32> to vector<1x256xf32>
    %23 = arith.subf %22, %15 : vector<1x256xf32>
    %24 = math.exp %23 : vector<1x256xf32>
    %cst_9 = arith.constant 1.000000e+00 : f32
    %25 = vector.broadcast %cst_9 : f32 to vector<1x256xf32>
    %26 = arith.subf %25, %24 : vector<1x256xf32>
    %cst_10 = arith.constant 0.000000e+00 : f32
    %27 = vector.broadcast %cst_10 : f32 to vector<1x256xf32>
    %28 = arith.maximumf %26, %27 : vector<1x256xf32>
    %29 = arith.mulf %28, %28 : vector<1x256xf32>
    %cst_11 = arith.constant -2.500000e-01 : f32
    %30 = vector.broadcast %cst_11 : f32 to vector<1x256xf32>
    %31 = arith.mulf %30, %29 : vector<1x256xf32>
    %32 = arith.mulf %31, %23 : vector<1x256xf32>
    %c0_12 = arith.constant 0 : index
    %c0_13 = arith.constant 0 : index
    %c0_14 = arith.constant 0 : index
    %33 = vector.load %arg4[%c0_12, %c0_13, %c0_14] : memref<1x1x256xf32, #tpu.memory_space<vmem>>, vector<1x1x256xf32>
    %34 = vector.shape_cast %32 : vector<1x256xf32> to vector<1x1x256xf32>
    %35 = arith.addf %33, %34 : vector<1x1x256xf32>
    %c0_15 = arith.constant 0 : index
    %c0_16 = arith.constant 0 : index
    %c0_17 = arith.constant 0 : index
    %36 = vector.load %arg4[%c0_15, %c0_16, %c0_17] : memref<1x1x256xf32, #tpu.memory_space<vmem>>, vector<1x1x256xf32>
    tpu.vector_store %arg4[%c0_15, %c0_16, %c0_17], %35 {strides = array<i32>} : memref<1x1x256xf32, #tpu.memory_space<vmem>>, vector<1x1x256xf32>,
    return
  }
  func.func @transform_0(%arg0: i32, %arg1: i32) -> (i32, i32, i32) {
    %c0_i32 = arith.constant 0 : i32
    %c0_i32_0 = arith.constant 0 : i32
    return %arg0, %c0_i32, %arg1 : i32, i32, i32
  }
  func.func @transform_1(%arg0: i32, %arg1: i32) -> (i32, i32, i32) {
    %c0_i32 = arith.constant 0 : i32
    %c0_i32_0 = arith.constant 0 : i32
    return %arg0, %c0_i32, %arg1 : i32, i32, i32
  }
  func.func @transform_2(%arg0: i32, %arg1: i32) -> (i32, i32, i32) {
    %c0_i32 = arith.constant 0 : i32
    %c0_i32_0 = arith.constant 0 : i32
    %c0_i32_1 = arith.constant 0 : i32
    return %arg0, %c0_i32, %c0_i32_0 : i32, i32, i32
  }
}

</mosaic_0001>

<bundles_post_ra>
// kernel: tpu_custom_call.1
= control target key start
LH: loop header
LB: loop body
LE: loop exit
PB: predicated region body
PF: predicated region fallthrough
CT: control target
= control target key end

     0   :  { %7 = vsyncpa [#allocation3], 0  ;;  %s982_s0 = inlined_call_operand.hbm [shape: f32[2,4,256], index: 0, kind: input, shape index: {}]   ;;  %s983_s1 = inlined_call_operand.hbm [shape: s32[2,1,256], index: 1, kind: input, shape index: {}]   ;;  %s984_s2 = inlined_call_operand.hbm [shape: f32[2,1,256], index: 2, kind: output, shape index: {}]  }
   0x1   :  { %9 = vsyncpa [#allocation3 + $0x1], 0 }
   0x2   :  { %10 = vsyncpa [#allocation6], 0 }
   0x3   :  { %12 = vsyncpa [#allocation6 + $0x1], 0 }
   0x4   :  { %13 = vsyncpa [#allocation4], 0 }
   0x5   :  { %15 = vsyncpa [#allocation4 + $0x1], 0  ;;  %s740_s9 = smov 0   ;;  %s742_s10 = smov 0  }
   0x6   :  { %s744_s11 = smov 0   ;;  %s746_s12 = smov 0  }
   0x7   :  { %s748_s13 = smov 0   ;;  %s750_s14 = smov 0  }
   0x8 LB: > { %s470_s15 = sadd.s32 4294967295, %s718_s14   ;;  %s471_s16 = sadd.s32 4294967294, %s718_s14   ;;  %s718_s14 = sphi %s750_s14, %s21_s14   ;;  %s714_s13 = sphi %s748_s13, %s1006_s13   ;;  %s710_s12 = sphi %s746_s12, %s1005_s12   ;;  %s706_s11 = sphi %s744_s11, %s1004_s11   ;;  %s702_s10 = sphi %s742_s10, %s1003_s10   ;;  %s698_s9 = sphi %s740_s9, %s1002_s9  }
   0x9   : > { %s33_s17 = sadd.s32 1, %s714_s13  ;;  %s42_s18 = sadd.s32 1, %s706_s11 }
   0xa   : > { %p35_p0 = scmp.ge.s32.totalorder %s33_s17, 2  ;;  %p49_p1 = scmp.ne.s32.totalorder %s706_s11, %s702_s10 }
   0xb   : > { %p50_p2 = scmp.eq.s32.totalorder %s718_s14, 0  ;;  %p55_p3 = scmp.ne.s32.totalorder %s702_s10, %s698_s9 }
   0xc   : > { %s1008_s17 = smov (%p35_p0, %s33_s17), 0  ;;  %p56_p5 = scmp.eq.s32.totalorder %s470_s15, 0 }
   0xd   : > { %p781_p4 = por %p50_p2, %p49_p1  ;;  %s37_s20 = ssub.s32 %s714_s13, %s1008_s17 }
   0xe   : > { %p107_p6 = scmp.eq.s32.totalorder %s470_s15, 1  ;;  %p40_p7 = scmp.eq.s32.totalorder %s37_s20, 0 }
   0xf   : > { %p787_p8 = por %p56_p5, %p55_p3  ;;  %p113_p10 = scmp.eq.s32.totalorder %s471_s16, 1 }
  0x10   : > { %p791_p9 = por %p107_p6, %p49_p1  ;;  %p509_p13 = scmp.lt.s32.totalorder %s718_s14, 2 }
  0x11   : > { %s988_s21 = scalar_select %p787_p8, 1, 0 }
  0x12   : > { %s989_s22 = scalar_select %p791_p9, 1, 0 }
  0x13   : > { %s796_s23 = scalar_select %p40_p7, %s706_s11, %s42_s18  }
  0x14   : > { %p798_p11 = por %p113_p10, %p55_p3  ;;  %s805_s25 = sand.u32 1, %s706_s11  }
  0x15   : > { %s474_s26 = sshll.u32 %s805_s25, 3  ;;  %s489_s27 = sshll.u32 %s714_s13, 7 }
  0x16   : > { %s990_s24 = scalar_select %p798_p11, 1, 0 }
  0x17   : > { %s812_s30 = scalar_lea.hbm %s982_s0, %s489_s27  ;;  %s137_s3 = scalar_lea.vmem [#allocation2], %s474_s26 }
  0x18   : > { %s147_s4 = sshll.u32 %s137_s3, 4  ;;  %p818_p0 = pnand %p509_p13, %p781_p4  ;;  %s814_s4 = int_to_ptr.vmem [resolvable:$true] %s147_s4 }
  0x19   : > { %s134_s6 = scalar_lea.sflag [#allocation3], %s805_s25  ;;  %s572_s7 = scalar_lea.hbm %s812_s30, 128 }
  0x1a   : > { %p573_p3 = scmp.ne.s32.totalorder %s812_s30, %s572_s7  ;;  %p574_p5 = pneg %p818_p0 }
  0x1b   : > { %s577_s16 = scalar_lea.hbm %s982_s0, 256  ;;  %p578_p4 = scmp.lt.u32.totalorder %s812_s30, %s982_s0 }
  0x1c   : > { %p575_p6 = pnand %p574_p5, %p573_p3  ;;  %p579_p10 = scmp.lt.u32.totalorder %s577_s16, %s572_s7 }
  0x1d   : > { %p581_p12 = scmp.lt.u32.totalorder %s572_s7, %s812_s30 }
  0x1e   : > { %p576_p7 = pneg %p575_p6  ;;  %p580_p13 = por %p579_p10, %p578_p4 }
  0x20   : > { %p582_p1 = por %p581_p12, %p580_p13 }
  0x22   : > { %p583_p2 = pnand %p582_p1, %p576_p7 }
  0x24   : > { %586 = shalt.err (!%p583_p2)
}
  0x25   : > { %s587_s20 = scalar_lea.vmem %s814_s4, 128  ;;  %s720_s26 = smov [#allocation2]  }
  0x26   : > { %p588_p3 = scmp.ne.s32.totalorder %s814_s4, %s587_s20  ;;  %s592_s27 = sshll.u32 %s720_s26, 4  ;;  %s593_s27 = int_to_ptr.vmem [resolvable:$false] %s592_s27 }
  0x27   : > { %s594_s28 = scalar_lea.vmem %s593_s27, 256  ;;  %p595_p9 = scmp.lt.s32.totalorder %s814_s4, %s593_s27 }
  0x28   : > { %p590_p6 = pnand %p588_p3, %p574_p5  ;;  %p596_p4 = scmp.lt.s32.totalorder %s594_s28, %s587_s20 }
  0x2a   : > { %p591_p11 = pneg %p590_p6  ;;  %p597_p10 = por %p596_p4, %p595_p9 }
  0x2c   : > { %p598_p12 = pnand %p597_p10, %p591_p11 }
  0x2e   : > { %601 = shalt.err (!%p598_p12)
}
  0x2f   : > { %501 = dma.hbm_to_vmem [thread:$0]  (!%p818_p0), %s812_s30, 128, %s814_s4, %s134_s6  }
  0x30   : > { %p992_p1 = scmp.lt.s32.totalorder %s718_s14, 3  ;;  %p993_p2 = scmp.ge.s32.totalorder %s718_s14, 1 }
  0x31   : > { %s477_s3 = sshll.u32 %s805_s25, 1  ;;  %s490_s7 = sshll.u32 %s714_s13, 5 }
  0x32   : > { %p854_p7 = pnand %p993_p2, %p992_p1  ;;  %s863_s16 = scalar_lea.hbm %s983_s1, %s490_s7 }
  0x33   : > { %s158_s18 = scalar_lea.vmem [#allocation5], %s477_s3  ;;  %s155_s30 = scalar_lea.sflag [#allocation6], %s805_s25 }
  0x34   : > { %s994_s29 = scalar_select %p854_p7, 1, 0 }
  0x35   : > { %s168_s19 = sshll.u32 %s158_s18, 4  ;;  %s602_s4 = scalar_lea.hbm %s863_s16, 32  ;;  %s169_s19 = int_to_ptr.vmem [resolvable:$true] %s168_s19 }
  0x36   : > { %p603_p9 = scmp.ne.s32.totalorder %s863_s16, %s602_s4  ;;  %s607_s26 = scalar_lea.hbm %s983_s1, 64 }
  0x37   : > { %p608_p3 = scmp.lt.u32.totalorder %s863_s16, %s983_s1  ;;  %p609_p6 = scmp.lt.u32.totalorder %s607_s26, %s602_s4 }
  0x38   : > { %p605_p11 = pnand %p603_p9, %p574_p5  ;;  %p611_p10 = scmp.lt.u32.totalorder %s602_s4, %s863_s16 }
  0x39   : > { %p610_p4 = por %p609_p6, %p608_p3 }
  0x3a   : > { %p606_p13 = pneg %p605_p11 }
  0x3b   : > { %p612_p12 = por %p611_p10, %p610_p4 }
  0x3d   : > { %p613_p1 = pnand %p612_p12, %p606_p13 }
  0x3f   : > { %616 = shalt.err (!%p613_p1)
}
  0x40   : > { %s617_s25 = scalar_lea.vmem %s169_s19, 32  ;;  %s721_s3 = smov [#allocation5]  }
  0x41   : > { %p618_p2 = scmp.ne.s32.totalorder %s169_s19, %s617_s25  ;;  %s622_s7 = sshll.u32 %s721_s3, 4  ;;  %s623_s7 = int_to_ptr.vmem [resolvable:$false] %s622_s7 }
  0x42   : > { %s624_s8 = scalar_lea.vmem %s623_s7, 64  ;;  %p625_p8 = scmp.lt.s32.totalorder %s169_s19, %s623_s7 }
  0x43   : > { %p620_p9 = pnand %p618_p2, %p574_p5  ;;  %p626_p7 = scmp.lt.s32.totalorder %s624_s8, %s617_s25 }
  0x45   : > { %p621_p11 = pneg %p620_p9  ;;  %p627_p3 = por %p626_p7, %p625_p8 }
  0x47   : > { %p628_p6 = pnand %p627_p3, %p621_p11 }
  0x49   : > { %631 = shalt.err (!%p628_p6)
}
  0x4a   : > { %504 = dma.hbm_to_vmem [thread:$0]  (!%p818_p0), %s863_s16, 32, %s169_s19, %s155_s30  }
  0x4b   : > { %p995_p13 = scmp.ne.s32.totalorder %s994_s29, 0 }
  0x4c   : > { %s888_s15 = sand.u32 (!%p995_p13), 1, %s702_s10   ;;  %p996_p5 = scmp.ne.s32.totalorder (!%p995_p13), %s988_s21, 0 }
  0x4d   : > { %177 = sbr.rel (%p995_p13) target bundleno = 198 (0xc6), region = 28  ;;  %s481_s18 = sshll.u32 (!%p995_p13), %s888_s15, 3 }
  0x4e   : > { %s180_s4 = scalar_lea.sflag (!%p995_p13), [#allocation3], %s888_s15  ;;  %s183_s6 = scalar_lea.vmem (!%p995_p13), [#allocation2], %s481_s18 }
  0x54   : > { %685 = dma.done.wait (%p996_p5), %s180_s4, 128  }
  0x55   : > { %687 = vsyncadd (%p996_p5), %s180_s4, 4294967168  ;;  %s482_s5 = sshll.u32 %s888_s15, 1  ;;  %s189_s29 = scalar_lea.sflag [#allocation6], %s888_s15 }
  0x56   : > { %s192_s16 = scalar_lea.vmem [#allocation5], %s482_s5 }
  0x57   : > { %689 = dma.done.wait (%p996_p5), %s189_s29, 32  }
  0x58   : > { %691 = vsyncadd (%p996_p5), %s189_s29, 4294967264  ;;  %v224_v0 = vlaneseq  ;;  %s906_s19 = scalar_lea.vmem [#allocation7], %s482_s5  ;;  %v722_v2 = vmov 0.0   ;;  %vm234_vm1 = vcmask 1043456   ;;  %v229_v3 = vld [vmem:[%s183_s6] sm:$0xff]  ;;  %s491_s21 = sshll.u32 %s710_s12, 5 }
  0x59   : > { %v232_v4 = vcombine.high %v229_v3, %v229_v3  ;;  %v235_v5 = vsel %vm234_vm1, %v229_v3, -inf  ;;  %v230_v24 = vld [vmem:[%s192_s16] sm:$0x3]  ;;  %s363_s30 = sshll.u32 %s906_s19, 4  ;;  %s930_s27 = scalar_lea.hbm %s984_s2, %s491_s21  ;;  %s932_s30 = int_to_ptr.vmem [resolvable:$true] %s363_s30 }
  0x5a   : > { %vm902_vm0 = vcmp.lt.s32.totalorder %v224_v0, 256  ;;  %v236_v6 = vrot.slane %v235_v5, 4  ;;  %v913_v20 = vshrl.u32 %v224_v0, 7  ;;  %s349_s28 = scalar_lea.sflag [#allocation4], %s888_s15  ;;  %s632_s25 = scalar_lea.vmem %s932_s30, 32 }
  0x5b   : > { %228 = vst.msk [vmem:[%s906_s19] sm:$0x3] %vm902_vm0, %v722_v2  ;;  %v242_v7 = vsel %vm234_vm1, %v232_v4, -inf  ;;  %p633_p8 = scmp.ne.s32.totalorder %s932_s30, %s632_s25  ;;  %p999_p0 = scmp.ne.s32.totalorder %s989_s22, 0 }
  0x5c   : > { %v237_v8 = vmax.f32 %v235_v5, %v236_v6  ;;  %v243_v9 = vrot.slane %v242_v7, 4  ;;  %v283_v23 = vsub.s32 0, %v913_v20  ;;  %v287_v25 = vsub.s32 1, %v913_v20  ;;  %s724_s12 = smov [#allocation7]  }
  0x5d   : > { %p634_p7 = pnand %p633_p8, %p999_p0  ;;  %s636_s3 = sshll.u32 %s724_s12, 4  ;;  %s637_s3 = int_to_ptr.vmem [resolvable:$false] %s636_s3 }
  0x5e   : > { %v238_v10 = vrot.slane %v237_v8, 2  ;;  %v244_v11 = vmax.f32 %v242_v7, %v243_v9  ;;  %v284_v26 = vrot.slane %v230_v24, %v283_v23  ;;  %v288_v27 = vrot.slane %v230_v24, %v287_v25  ;;  %s638_s7 = scalar_lea.vmem %s637_s3, 64  ;;  %p639_p10 = scmp.lt.s32.totalorder %s932_s30, %s637_s3 }
  0x5f   : > { %p635_p4 = pneg %p634_p7  ;;  %p640_p12 = scmp.lt.s32.totalorder %s638_s7, %s632_s25 }
  0x60   : > { %v239_v12 = vmax.f32 %v237_v8, %v238_v10  ;;  %v245_v13 = vrot.slane %v244_v11, 2  ;;  %vm289_vm2 = vcmp.eq.s32.totalorder %v913_v20, %v284_v26  ;;  %vm290_vm3 = vcmp.eq.s32.totalorder %v913_v20, %v288_v27 }
  0x61   : > { %v291_v28 = vsel %vm289_vm2, %v229_v3, 0.0  ;;  %v292_v32 = vsel %vm290_vm3, %v232_v4, 0.0  ;;  %p641_p1 = por %p640_p12, %p639_p10 }
  0x62   : > { %v240_v14 = vrot.slane %v239_v12, 1  ;;  %v246_v15 = vmax.f32 %v244_v11, %v245_v13  ;;  %v293_v34 = vsel %vm234_vm1, %v291_v28, 0.0  ;;  %v300_v38 = vsel %vm234_vm1, %v292_v32, 0.0  ;;  %v323_v26 = vld [vmem:[%s906_s19] sm:$0x3] }
  0x63   : > { %v294_v39 = vrot.slane %v293_v34, 4  ;;  %v301_v42 = vrot.slane %v300_v38, 4  ;;  %p642_p2 = pnand %p641_p1, %p635_p4 }
  0x64   : > { %v241_v16 = vmax.f32 %v239_v12, %v240_v14  ;;  %v247_v17 = vrot.slane %v246_v15, 1  ;;  %v723_v12 = vmov 1966171168  }
  0x65   : > { %v295_v45 = vadd.f32 %v294_v39, %v293_v34  ;;  %v302_v48 = vadd.f32 %v301_v42, %v300_v38  ;;  %v328_v13 = vunpack.c.l.s4 %v723_v12 }
  0x66   : > { %v248_v18 = vmax.f32 %v246_v15, %v247_v17 }
  0x67   : > { %v296_v51 = vrot.slane %v295_v45, 2  ;;  %v303_v53 = vrot.slane %v302_v48, 2 }
  0x68   : > { %v251_v19 = vcombine.low %v241_v16, %v248_v18 }
  0x69   : > { %v297_v54 = vadd.f32 %v296_v51, %v295_v45  ;;  %v304_v55 = vadd.f32 %v303_v53, %v302_v48 }
  0x6a   : > { %v253_v21 = vsub.f32 %v229_v3, %v251_v19 }
  0x6b   : > { %v298_v56 = vrot.slane %v297_v54, 1  ;;  %v305_v57 = vrot.slane %v304_v55, 1 }
  0x6c   : > { %v254_v22 = vmul.f32 1.442695, %v253_v21 }
  0x6d   : > { %v299_v60 = vadd.f32 %v298_v56, %v297_v54  ;;  %v306_v0 = vadd.f32 %v305_v57, %v304_v55 }
  0x6e   : > { %562 = vpow2.f32 %v254_v22 }
  0x78   : > { %v563_v29 = vpop.eup %562 }
  0x79   : > { %v257_v30 = vcombine.high %v563_v29, %v563_v29  ;;  %v259_v31 = vsel %vm234_vm1, %v563_v29, 0.0 }
  0x7a   : > { %v260_v33 = vrot.slane %v259_v31, 4 }
  0x7b   : > { %v266_v35 = vsel %vm234_vm1, %v257_v30, 0.0 }
  0x7c   : > { %v261_v36 = vadd.f32 %v260_v33, %v259_v31  ;;  %v267_v37 = vrot.slane %v266_v35, 4 }
  0x7e   : > { %v262_v40 = vrot.slane %v261_v36, 2  ;;  %v268_v41 = vadd.f32 %v267_v37, %v266_v35 }
  0x80   : > { %v263_v43 = vadd.f32 %v262_v40, %v261_v36  ;;  %v269_v44 = vrot.slane %v268_v41, 2 }
  0x82   : > { %v264_v46 = vrot.slane %v263_v43, 1  ;;  %v270_v47 = vadd.f32 %v269_v44, %v268_v41 }
  0x84   : > { %v265_v49 = vadd.f32 %v264_v46, %v263_v43  ;;  %v271_v50 = vrot.slane %v270_v47, 1 }
  0x86   : > { %v272_v52 = vadd.f32 %v271_v50, %v270_v47  ;;  %564 = vlog2.f32 %v265_v49 }
  0x88   : > { %566 = vlog2.f32 %v272_v52 }
  0x90   : > { %v565_v58 = vpop.eup %564 }
  0x91   : > { %v274_v59 = vmul.f32 0.6931472, %v565_v58 }
  0x92   : > { %v567_v61 = vpop.eup %566 }
  0x93   : > { %v276_v62 = vmul.f32 0.6931472, %v567_v61  ;;  %v277_v63 = vadd.f32 %v274_v59, %v241_v16 }
  0x95   : > { %v278_v2 = vadd.f32 %v276_v62, %v248_v18  ;;  %v307_v3 = vsub.f32 %v299_v60, %v277_v63  ;;  %v329_v18 = vunpack.c.0.s8 %v328_v13 }
  0x97   : > { %v308_v4 = vsub.f32 %v306_v0, %v278_v2  ;;  %v309_v5 = vmul.f32 1.442695, %v307_v3  ;;  %v332_v23 = vsub.s32 %v329_v18, %v913_v20 }
  0x99   : > { %568 = vpow2.f32 %v309_v5  ;;  %v311_v6 = vmul.f32 1.442695, %v308_v4 }
  0x9b   : > { %570 = vpow2.f32 %v311_v6 }
  0xa3   : > { %v569_v7 = vpop.eup %568 }
  0xa4   : > { %v313_v8 = vsub.f32 1.0, %v569_v7 }
  0xa5   : > { %v571_v9 = vpop.eup %570 }
  0xa6   : > { %v314_v10 = vsub.f32 1.0, %v571_v9  ;;  %v315_v11 = vmax.f32 %v313_v8, 0.0 }
  0xa8   : > { %v316_v14 = vmax.f32 %v314_v10, 0.0  ;;  %v317_v15 = vmul.f32 %v315_v11, %v315_v11 }
  0xaa   : > { %v318_v16 = vmul.f32 %v316_v14, %v316_v14  ;;  %v319_v17 = vmul.f32 -0.25, %v317_v15 }
  0xac   : > { %v320_v19 = vmul.f32 -0.25, %v318_v16  ;;  %v321_v21 = vmul.f32 %v319_v17, %v307_v3 }
  0xae   : > { %v322_v22 = vmul.f32 %v320_v19, %v308_v4 }
  0xb0   : > { %v326_v24 = vcombine.low %v321_v21, %v322_v22 }
  0xb2   : > { %v333_v25 = vrot.slane %v326_v24, %v332_v23 }
  0xb4   : > { %v340_v27 = vrot.slane %v333_v25, %v332_v23 }
  0xb6   : > { %v342_v28 = vadd.f32 %v340_v27, %v323_v26 }
  0xb8   : > { %347 = vst.msk [vmem:[%s906_s19] sm:$0x3] %vm902_vm0, %v342_v28 }
  0xb9   : > { %645 = shalt.err (!%p642_p2)
}
  0xba   : > { %s646_s8 = scalar_lea.hbm %s930_s27, 32  ;;  %s650_s4 = scalar_lea.hbm %s984_s2, 64 }
  0xbb   : > { %p647_p9 = scmp.ne.s32.totalorder %s930_s27, %s646_s8  ;;  %p651_p6 = scmp.lt.u32.totalorder %s930_s27, %s984_s2 }
  0xbc   : > { %p652_p13 = scmp.lt.u32.totalorder %s650_s4, %s646_s8  ;;  %p654_p8 = scmp.lt.u32.totalorder %s646_s8, %s930_s27 }
  0xbd   : > { %p648_p11 = pnand %p647_p9, %p999_p0 }
  0xbe   : > { %p653_p5 = por %p652_p13, %p651_p6 }
  0xbf   : > { %p649_p3 = pneg %p648_p11 }
  0xc0   : > { %p655_p7 = por %p654_p8, %p653_p5 }
  0xc2   : > { %p656_p4 = pnand %p655_p7, %p649_p3 }
  0xc4   : > { %659 = shalt.err (!%p656_p4)
}
  0xc5   : > { %496 = dma.vmem_to_hbm [thread:$0]  (%p999_p0), %s932_s30, 32, %s930_s27, %s349_s28  }
  0xc6 PF: > { %s375_s29 = sand.u32 1, %s698_s9   ;;  %p1000_p10 = scmp.ne.s32.totalorder %s990_s24, 0 }
  0xc7   : > { %p1001_p12 = scmp.ge.s32.totalorder %s718_s14, 2  ;;  %s376_s16 = scalar_lea.sflag [#allocation4], %s375_s29 }
  0xc9   : > { %p506_p1 = pnand %p1001_p12, %p1000_p10 }
  0xcb   : > { %693 = dma.done.wait (!%p506_p1), %s376_s16, 32  }
  0xcc   : > { %695 = vsyncadd (!%p506_p1), %s376_s16, 4294967264  ;;  %s21_s14 = sadd.s32 1, %s718_s14   ;;  %s1002_s9 = smov %s702_s10 }
  0xcd   : > { %p18_p2 = scmp.ge.s32.totalorder %s21_s14, 4   ;;  %s1003_s10 = smov %s706_s11 }
  0xce   : > { %s1004_s11 = smov %s796_s23  ;;  %s1005_s12 = smov %s714_s13 }
  0xcf   : > { %s1006_s13 = smov %s1008_s17  ;;  %20 = sbr.rel (!%p18_p2) target bundleno = 8 (0x8), region = 90 }
  0xd6   :  { %381 = vsyncpa [#allocation3], 1 }
  0xd7   :  { %383 = vsyncpa [#allocation3 + $0x1], 1 }
  0xd8   :  { %384 = vsyncpa [#allocation6], 1 }
  0xd9   :  { %386 = vsyncpa [#allocation6 + $0x1], 1 }
  0xda   :  { %387 = vsyncpa [#allocation4], 1 }
  0xdb   :  { %389 = vsyncpa [#allocation4 + $0x1], 1 }

</bundles_post_ra>
